<compile_context>
chip_gen: v6e
topology: v6e:2x2x1
jax: 0.10.0
libtpu: 0.0.40
codegen_flags: <defaults>
</compile_context>

<pallas_src>
import math

import jax
import jax.numpy as jnp
from jax.experimental import pallas as pl
from jax.experimental.pallas import tpu as pltpu


def _round_up(x, m):
    return ((x + m - 1) // m) * m


def _dueling_kernel(state_ref, w1_ref, b1_ref, wbr_ref, bbr_ref,
                    whead_ref, bhead_ref, out_ref):
    """Per-batch-tile forward: 3 MXU matmuls, f32 accumulation + elementwise."""
    mxu_dtype = w1_ref.dtype

    # Shared hidden layer: x = relu(state @ W1 + b1)                  (bm, H)
    x = jnp.dot(state_ref[...].astype(mxu_dtype), w1_ref[...],
                preferred_element_type=jnp.float32)
    x = jnp.maximum(x + b1_ref[...], 0.0)

    # Fused branch layer 1: h = relu(x @ [Wa1|Wv1] + [ba1|bv1])       (bm, 2H)
    h = jnp.dot(x.astype(mxu_dtype), wbr_ref[...],
                preferred_element_type=jnp.float32)
    h = jnp.maximum(h + bbr_ref[...], 0.0)

    # Fused, value-folded, lane-padded head:                          (bm, 128)
    #   head[:, :n_actions]            = advantage + value
    #   head[:, n_actions:n_actions+1] = value
    #   head[:, n_actions+1:]          = 0
    head = jnp.dot(h.astype(mxu_dtype), whead_ref[...],
                   preferred_element_type=jnp.float32) + bhead_ref[...]

    # Lane-dense (128-wide), per-tile store — pipelines with the next tile.
    out_ref[...] = head


def pack_params(params, mxu_dtype=jnp.bfloat16):
    """Fuse branch weights/biases once, outside the kernel (host/XLA side)."""
    w1, b1, wa1, ba1, wa2, ba2, wv1, bv1, wv2, bv2 = params
    hidden = w1.shape[1]
    n_actions = wa2.shape[1]
    out_pad = _round_up(n_actions + 1, 128)

    # [Wa1 | Wv1] -> one (H, 2H) matmul; same for the biases.
    w_br = jnp.concatenate([wa1, wv1], axis=1)          # (H, 2H)
    b_br = jnp.concatenate([ba1, bv1], axis=1)          # (1, 2H)

    # Block head packing with value folded into the advantage columns:
    #   cols [0, n_actions)   : advantage + value
    #   col  n_actions        : value
    w_head = jnp.zeros((2 * hidden, out_pad), jnp.float32)
    w_head = w_head.at[:hidden, :n_actions].set(wa2)
    w_head = w_head.at[hidden:, :n_actions].set(
        jnp.broadcast_to(wv2, (hidden, n_actions)))
    w_head = w_head.at[hidden:, n_actions:n_actions + 1].set(wv2)
    b_head = jnp.zeros((1, out_pad), jnp.float32)
    b_head = b_head.at[:, :n_actions].set(ba2 + bv2)
    b_head = b_head.at[:, n_actions:n_actions + 1].set(bv2)

    # Weights in the MXU dtype (bf16 by default); biases stay f32 so the
    # elementwise path (bias add + ReLU) is f32 on every chip generation.
    return (w1.astype(mxu_dtype), b1,
            w_br.astype(mxu_dtype), b_br,
            w_head.astype(mxu_dtype), b_head,
            n_actions)


def dueling_net_forward(state, packed, *, block_rows=1024):
    w1, b1, w_br, b_br, w_head, b_head, n_actions = packed
    batch, n_states = state.shape
    hidden = w1.shape[1]
    out_pad = w_head.shape[1]

    bm = min(block_rows, _round_up(batch, 8))
    batch_pad = _round_up(batch, bm)
    num_blocks = batch_pad // bm
    if batch_pad != batch:
        state = jnp.pad(state, ((0, batch_pad - batch), (0, 0)))

    out_padded = pl.pallas_call(
        _dueling_kernel,
        out_shape=jax.ShapeDtypeStruct((batch_pad, out_pad), jnp.float32),
        grid=(num_blocks,),
        in_specs=[
            pl.BlockSpec((bm, n_states), lambda i: (i, 0)),        # state tile
            pl.BlockSpec((n_states, hidden), lambda i: (0, 0)),    # W1 (resident)
            pl.BlockSpec((1, hidden), lambda i: (0, 0)),           # b1
            pl.BlockSpec((hidden, 2 * hidden), lambda i: (0, 0)),  # [Wa1|Wv1]
            pl.BlockSpec((1, 2 * hidden), lambda i: (0, 0)),       # [ba1|bv1]
            pl.BlockSpec((2 * hidden, out_pad), lambda i: (0, 0)), # head weights
            pl.BlockSpec((1, out_pad), lambda i: (0, 0)),          # head bias
        ],
        # Per-tile output blocks: no whole-batch VMEM residency, writeback
        # overlaps compute, and the grid axis is fully independent.
        out_specs=pl.BlockSpec((bm, out_pad), lambda i: (i, 0)),
        compiler_params=pltpu.CompilerParams(
            dimension_semantics=("parallel",)),   # dual-TC sharding on v7x
    )(state, w1, b1, w_br, b_br, w_head, b_head)

    # Wrapper-side finalize (trivial fused XLA ops on the valid rows only):
    #   q_plus_v = advantage + value, val = value (padded tail rows sliced off
    #   before the mean, so they never pollute advantage.mean()).
    head = out_padded[:batch].astype(jnp.float32)
    q_plus_v = head[:, :n_actions]
    val = head[:, n_actions:n_actions + 1]
    adv_mean = jnp.mean(q_plus_v - val)          # == advantage.mean()
    return q_plus_v - adv_mean


def init_linear(key, fan_in, fan_out):
    """PyTorch nn.Linear default init: U(-1/sqrt(fan_in), 1/sqrt(fan_in))."""
    kw, kb = jax.random.split(key)
    bound = 1.0 / math.sqrt(fan_in)
    w = jax.random.uniform(kw, (fan_in, fan_out), jnp.float32, -bound, bound)
    b = jax.random.uniform(kb, (1, fan_out), jnp.float32, -bound, bound)
    return w, b


def make_params(key, n_states, n_actions, hidden_dim):
    keys = jax.random.split(key, 5)
    w1, b1 = init_linear(keys[0], n_states, hidden_dim)
    wa1, ba1 = init_linear(keys[1], hidden_dim, hidden_dim)
    wa2, ba2 = init_linear(keys[2], hidden_dim, n_actions)
    wv1, bv1 = init_linear(keys[3], hidden_dim, hidden_dim)
    wv2, bv2 = init_linear(keys[4], hidden_dim, 1)
    return (w1, b1, wa1, ba1, wa2, ba2, wv1, bv1, wv2, bv2)


def reference_forward(state, params):
    """Pure-JAX f32 reference matching the PyTorch forward (unfused weights)."""
    (w1, b1, wa1, ba1, wa2, ba2, wv1, bv1, wv2, bv2) = params
    x = jnp.maximum(state @ w1 + b1, 0.0)
    adv = jnp.maximum(x @ wa1 + ba1, 0.0) @ wa2 + ba2
    val = jnp.maximum(x @ wv1 + bv1, 0.0) @ wv2 + bv2
    return val + adv - adv.mean()


if __name__ == "__main__":
    n_states, n_actions, hidden_dim = 16, 4, 128

    key = jax.random.PRNGKey(0)
    k_params, k_state = jax.random.split(key)
    params = make_params(k_params, n_states, n_actions, hidden_dim)
    packed_bf16 = pack_params(params)                              # fast path
    packed_f32 = pack_params(params, mxu_dtype=jnp.float32)        # parity path

    # Small single-tile case (matches the toy DQN usage).
    state = jax.random.normal(k_state, (2, n_states), jnp.float32)
    ref = reference_forward(state, params)

    out_f32 = jax.block_until_ready(dueling_net_forward(state, packed_f32))
    assert out_f32.shape == (2, n_actions)
    assert jnp.allclose(out_f32, ref, atol=1e-4, rtol=1e-4), (out_f32, ref)

    out_bf16 = jax.block_until_ready(dueling_net_forward(state, packed_bf16))
    assert out_bf16.shape == (2, n_actions)
    assert jnp.allclose(out_bf16, ref, atol=5e-2), (out_bf16, ref)

    # Multi-tile case: exercises the batch grid, padded tail rows (excluded
    # from the mean in the wrapper), per-tile output blocks and the parallel
    # grid axis.
    state2 = jax.random.normal(jax.random.PRNGKey(1), (19, n_states),
                               jnp.float32)
    ref2 = reference_forward(state2, params)

    out2_f32 = jax.block_until_ready(
        dueling_net_forward(state2, packed_f32, block_rows=8))
    assert out2_f32.shape == (19, n_actions)
    assert jnp.allclose(out2_f32, ref2, atol=1e-4, rtol=1e-4), (out2_f32, ref2)

    out2_bf16 = jax.block_until_ready(
        dueling_net_forward(state2, packed_bf16, block_rows=8))
    assert out2_bf16.shape == (19, n_actions)
    assert jnp.allclose(out2_bf16, ref2, atol=5e-2), (out2_bf16, ref2)

    print("KERNEL_OK")
</pallas_src>

<mosaic_0001>
module attributes {stable_mosaic.version = 11 : i64} {
  func.func @_dueling_kernel(%arg0: i32, %arg1: memref<8x16xf32, #tpu.memory_space<vmem>>, %arg2: memref<16x128xf32, #tpu.memory_space<vmem>>, %arg3: memref<1x128xf32, #tpu.memory_space<vmem>>, %arg4: memref<128x256xf32, #tpu.memory_space<vmem>>, %arg5: memref<1x256xf32, #tpu.memory_space<vmem>>, %arg6: memref<256x128xf32, #tpu.memory_space<vmem>>, %arg7: memref<1x128xf32, #tpu.memory_space<vmem>>, %arg8: memref<8x128xf32, #tpu.memory_space<vmem>>) attributes {dimension_semantics = [#tpu.dimension_semantics<parallel>], iteration_bounds = array<i64: 1>, scalar_prefetch = 0 : i64, scratch_operands = 0 : i64, tpu.core_type = #tpu.core_type<tc>, window_params = [{transform_indices = @transform_0, window_bounds = array<i64: 8, 16>}, {pipeline_mode = #tpu.pipeline_mode<synchronous>, transform_indices = @transform_1, window_bounds = array<i64: 16, 128>}, {pipeline_mode = #tpu.pipeline_mode<synchronous>, transform_indices = @transform_2, window_bounds = array<i64: 1, 128>}, {pipeline_mode = #tpu.pipeline_mode<synchronous>, transform_indices = @transform_3, window_bounds = array<i64: 128, 256>}, {pipeline_mode = #tpu.pipeline_mode<synchronous>, transform_indices = @transform_4, window_bounds = array<i64: 1, 256>}, {pipeline_mode = #tpu.pipeline_mode<synchronous>, transform_indices = @transform_5, window_bounds = array<i64: 256, 128>}, {pipeline_mode = #tpu.pipeline_mode<synchronous>, transform_indices = @transform_6, window_bounds = array<i64: 1, 128>}, {transform_indices = @transform_7, window_bounds = array<i64: 8, 128>}]} {
    %c0 = arith.constant 0 : index
    %c0_0 = arith.constant 0 : index
    %0 = vector.load %arg1[%c0, %c0_0] : memref<8x16xf32, #tpu.memory_space<vmem>>, vector<8x16xf32>
    %c0_1 = arith.constant 0 : index
    %c0_2 = arith.constant 0 : index
    %1 = vector.load %arg2[%c0_1, %c0_2] : memref<16x128xf32, #tpu.memory_space<vmem>>, vector<16x128xf32>
    %cst = arith.constant dense<0.000000e+00> : vector<8x128xf32>
    %2 = tpu.matmul %0, %1, %cst {dimension_numbers = #tpu.dot_dimension_numbers<[1], [0], [0], [1], [0, 0, 1, 1], [], []>} : vector<8x16xf32>, vector<16x128xf32>, vector<8x128xf32> -> vector<8x128xf32>
    %c0_3 = arith.constant 0 : index
    %c0_4 = arith.constant 0 : index
    %3 = vector.load %arg3[%c0_3, %c0_4] : memref<1x128xf32, #tpu.memory_space<vmem>>, vector<1x128xf32>
    %4 = vector.broadcast %3 : vector<1x128xf32> to vector<8x128xf32>
    %5 = arith.addf %2, %4 : vector<8x128xf32>
    %cst_5 = arith.constant 0.000000e+00 : f32
    %6 = vector.broadcast %cst_5 : f32 to vector<8x128xf32>
    %7 = arith.maximumf %5, %6 : vector<8x128xf32>
    %c0_6 = arith.constant 0 : index
    %c0_7 = arith.constant 0 : index
    %8 = vector.load %arg4[%c0_6, %c0_7] : memref<128x256xf32, #tpu.memory_space<vmem>>, vector<128x256xf32>
    %cst_8 = arith.constant dense<0.000000e+00> : vector<8x256xf32>
    %9 = tpu.matmul %7, %8, %cst_8 {dimension_numbers = #tpu.dot_dimension_numbers<[1], [0], [0], [1], [0, 0, 1, 1], [], []>} : vector<8x128xf32>, vector<128x256xf32>, vector<8x256xf32> -> vector<8x256xf32>
    %c0_9 = arith.constant 0 : index
    %c0_10 = arith.constant 0 : index
    %10 = vector.load %arg5[%c0_9, %c0_10] : memref<1x256xf32, #tpu.memory_space<vmem>>, vector<1x256xf32>
    %11 = vector.broadcast %10 : vector<1x256xf32> to vector<8x256xf32>
    %12 = arith.addf %9, %11 : vector<8x256xf32>
    %cst_11 = arith.constant 0.000000e+00 : f32
    %13 = vector.broadcast %cst_11 : f32 to vector<8x256xf32>
    %14 = arith.maximumf %12, %13 : vector<8x256xf32>
    %c0_12 = arith.constant 0 : index
    %c0_13 = arith.constant 0 : index
    %15 = vector.load %arg6[%c0_12, %c0_13] : memref<256x128xf32, #tpu.memory_space<vmem>>, vector<256x128xf32>
    %cst_14 = arith.constant dense<0.000000e+00> : vector<8x128xf32>
    %16 = tpu.matmul %14, %15, %cst_14 {dimension_numbers = #tpu.dot_dimension_numbers<[1], [0], [0], [1], [0, 0, 1, 1], [], []>} : vector<8x256xf32>, vector<256x128xf32>, vector<8x128xf32> -> vector<8x128xf32>
    %c0_15 = arith.constant 0 : index
    %c0_16 = arith.constant 0 : index
    %17 = vector.load %arg7[%c0_15, %c0_16] : memref<1x128xf32, #tpu.memory_space<vmem>>, vector<1x128xf32>
    %18 = vector.broadcast %17 : vector<1x128xf32> to vector<8x128xf32>
    %19 = arith.addf %16, %18 : vector<8x128xf32>
    %c0_17 = arith.constant 0 : index
    %c0_18 = arith.constant 0 : index
    %20 = vector.load %arg8[%c0_17, %c0_18] : memref<8x128xf32, #tpu.memory_space<vmem>>, vector<8x128xf32>
    tpu.vector_store %arg8[%c0_17, %c0_18], %19 {strides = array<i32>} : memref<8x128xf32, #tpu.memory_space<vmem>>, vector<8x128xf32>,
    return
  }
  func.func @transform_0(%arg0: i32) -> (i32, i32) {
    %c0_i32 = arith.constant 0 : i32
    %c0_i32_0 = arith.constant 0 : i32
    return %arg0, %c0_i32 : i32, i32
  }
  func.func @transform_1(%arg0: i32) -> (i32, i32) {
    %c0_i32 = arith.constant 0 : i32
    %c0_i32_0 = arith.constant 0 : i32
    %c0_i32_1 = arith.constant 0 : i32
    return %c0_i32, %c0_i32_0 : i32, i32
  }
  func.func @transform_2(%arg0: i32) -> (i32, i32) {
    %c0_i32 = arith.constant 0 : i32
    %c0_i32_0 = arith.constant 0 : i32
    %c0_i32_1 = arith.constant 0 : i32
    return %c0_i32, %c0_i32_0 : i32, i32
  }
  func.func @transform_3(%arg0: i32) -> (i32, i32) {
    %c0_i32 = arith.constant 0 : i32
    %c0_i32_0 = arith.constant 0 : i32
    %c0_i32_1 = arith.constant 0 : i32
    return %c0_i32, %c0_i32_0 : i32, i32
  }
  func.func @transform_4(%arg0: i32) -> (i32, i32) {
    %c0_i32 = arith.constant 0 : i32
    %c0_i32_0 = arith.constant 0 : i32
    %c0_i32_1 = arith.constant 0 : i32
    return %c0_i32, %c0_i32_0 : i32, i32
  }
  func.func @transform_5(%arg0: i32) -> (i32, i32) {
    %c0_i32 = arith.constant 0 : i32
    %c0_i32_0 = arith.constant 0 : i32
    %c0_i32_1 = arith.constant 0 : i32
    return %c0_i32, %c0_i32_0 : i32, i32
  }
  func.func @transform_6(%arg0: i32) -> (i32, i32) {
    %c0_i32 = arith.constant 0 : i32
    %c0_i32_0 = arith.constant 0 : i32
    %c0_i32_1 = arith.constant 0 : i32
    return %c0_i32, %c0_i32_0 : i32, i32
  }
  func.func @transform_7(%arg0: i32) -> (i32, i32) {
    %c0_i32 = arith.constant 0 : i32
    %c0_i32_0 = arith.constant 0 : i32
    return %arg0, %c0_i32 : i32, i32
  }
}

</mosaic_0001>

<bundles_post_ra>
// kernel: tpu_custom_call.1
= control target key start
LH: loop header
LB: loop body
LE: loop exit
PB: predicated region body
PF: predicated region fallthrough
CT: control target
= control target key end

     0   :  { %12 = vsyncpa [#allocation3], 0  ;;  %s657_s0 = inlined_call_operand.hbm [shape: f32[8,16], index: 0, kind: input, shape index: {}]   ;;  %s658_s1 = inlined_call_operand.hbm [shape: f32[16,128], index: 1, kind: input, shape index: {}]   ;;  %s659_s2 = inlined_call_operand.vmem [shape: f32[1,128], index: 2, kind: input, shape index: {}]   ;;  %s660_s3 = inlined_call_operand.hbm [shape: f32[128,256], index: 3, kind: input, shape index: {}]   ;;  %s661_s4 = inlined_call_operand.vmem [shape: f32[1,256], index: 4, kind: input, shape index: {}]   ;;  %s662_s5 = inlined_call_operand.hbm [shape: f32[256,128], index: 5, kind: input, shape index: {}]   ;;  %s663_s6 = inlined_call_operand.vmem [shape: f32[1,128], index: 6, kind: input, shape index: {}]   ;;  %s664_s7 = inlined_call_operand.hbm [shape: f32[8,128], index: 7, kind: output, shape index: {}]  }
   0x1   :  { %13 = vsyncpa [#allocation6], 0 }
   0x2   :  { %14 = vsyncpa [#allocation9], 0 }
   0x3   :  { %15 = vsyncpa [#allocation4], 0  ;;  %s576_s24 = smov [#allocation5]  }
   0x4   :  { %s31_s25 = sshll.u32 %s576_s24, 4  ;;  %s32_s25 = int_to_ptr.vmem [resolvable:$true] %s31_s25 }
   0x5   :  { %s476_s26 = scalar_lea.vmem %s32_s25, 256  ;;  %p481_p1 = scmp.lt.s32.totalorder %s32_s25, %s32_s25 }
   0x6   :  { %p477_p0 = scmp.ne.s32.totalorder %s32_s25, %s476_s26  ;;  %p482_p2 = scmp.lt.s32.totalorder %s476_s26, %s476_s26 }
   0x8   :  { %p483_p3 = por %p482_p2, %p481_p1 }
   0xa   :  { %p484_p4 = pnand %p483_p3, %p477_p0 }
   0xc   :  { %487 = shalt.err (!%p484_p4)
}
   0xd   :  { %s577_s27 = smov 128   ;;  %s578_s28 = smov 8  }
   0xe   :  { %37 = dma.hbm_to_vmem [thread:$0]  %s658_s1, 256, %s32_s25, [#allocation6], %s577_s27, %s577_s27, %s578_s28  }
   0xf   :  { %s579_s8 = smov [#allocation2]   ;;  %s580_s10 = smov [#allocation7]  }
  0x10   :  { %s22_s9 = sshll.u32 %s579_s8, 4  ;;  %s45_s11 = sshll.u32 %s580_s10, 4  ;;  %s23_s9 = int_to_ptr.vmem [resolvable:$true] %s22_s9  ;;  %s46_s11 = int_to_ptr.vmem [resolvable:$true] %s45_s11 }
  0x11   :  { %s496_s12 = scalar_lea.vmem %s23_s9, 128  ;;  %p501_p6 = scmp.lt.s32.totalorder %s23_s9, %s23_s9 }
  0x12   :  { %p497_p5 = scmp.ne.s32.totalorder %s23_s9, %s496_s12  ;;  %p502_p7 = scmp.lt.s32.totalorder %s496_s12, %s496_s12 }
  0x14   :  { %p503_p8 = por %p502_p7, %p501_p6 }
  0x16   :  { %p504_p9 = pnand %p503_p8, %p497_p5 }
  0x18   :  { %507 = shalt.err (!%p504_p9)
}
  0x19   :  { %25 = dma.hbm_to_vmem [thread:$0]  %s657_s0, 128, %s23_s9, [#allocation3]  }
  0x1a   :  { %s516_s15 = scalar_lea.vmem %s46_s11, 4096  ;;  %p521_p11 = scmp.lt.s32.totalorder %s46_s11, %s46_s11 }
  0x1b   :  { %p517_p10 = scmp.ne.s32.totalorder %s46_s11, %s516_s15  ;;  %p522_p12 = scmp.lt.s32.totalorder %s516_s15, %s516_s15 }
  0x1d   :  { %p523_p13 = por %p522_p12, %p521_p11 }
  0x1f   :  { %p524_p0 = pnand %p523_p13, %p517_p10 }
  0x21   :  { %527 = shalt.err (!%p524_p0)
}
  0x22   :  { %s581_s1 = smov 256   ;;  %s582_s16 = smov 16  }
  0x23   :  { %51 = dma.hbm_to_vmem [thread:$0]  %s660_s3, 4096, %s46_s11, [#allocation6], %s581_s1, %s581_s1, %s582_s16  }
  0x24   :  { %s583_s19 = smov [#allocation8]  }
  0x25   :  { %s59_s20 = sshll.u32 %s583_s19, 4  ;;  %s60_s20 = int_to_ptr.vmem [resolvable:$true] %s59_s20 }
  0x26   :  { %s536_s21 = scalar_lea.vmem %s60_s20, 4096  ;;  %p541_p2 = scmp.lt.s32.totalorder %s60_s20, %s60_s20 }
  0x27   :  { %p537_p1 = scmp.ne.s32.totalorder %s60_s20, %s536_s21  ;;  %p542_p3 = scmp.lt.s32.totalorder %s536_s21, %s536_s21 }
  0x29   :  { %p543_p4 = por %p542_p3, %p541_p2 }
  0x2b   :  { %p544_p5 = pnand %p543_p4, %p537_p1 }
  0x2d   :  { %547 = shalt.err (!%p544_p5)
}
  0x2e   :  { %65 = dma.hbm_to_vmem [thread:$0]  %s662_s5, 4096, %s60_s20, [#allocation9], %s577_s27, %s577_s27, %s578_s28  }
  0x2f   :  { %568 = dma.done.wait [#allocation3], 128  }
  0x30   :  { %569 = vsyncadd [#allocation3], 4294967168 }
  0x31   :  { %570 = dma.done.wait [#allocation6], 4352  }
  0x32   :  { %571 = vsyncadd [#allocation6], 4294962944 }
  0x33   :  { %572 = dma.done.wait [#allocation9], 4096  }
  0x34   :  { %573 = vsyncadd [#allocation9], 4294963200  ;;  %v584_v0 = vmov 0.0   ;;  %vm585_vm0 = vmmov 0   ;;  %v82_v1 = vld [vmem:[#allocation5 + $0x8] sm:$0xff]  ;;  %v81_v2 = vld [vmem:[#allocation5] sm:$0xff] }
  0x35   :  { %450 = vmatprep.subr.mxu0 %v584_v0  ;;  %454 = vmatprep.mubr.msk.f32.mxu0 %vm585_vm0, %v584_v0  ;;  %v80_v3 = vld [vmem:[#allocation2] sm:$0xff]  ;;  %vm90_vm1 = vcmask 130048   ;;  %v196_v4 = vld [vmem:[#allocation7 + $0xf8] sm:$0xff]  ;;  %v195_v5 = vld [vmem:[#allocation7 + $0xf0] sm:$0xff]  ;;  %s586_s26 = smov [#allocation10]  }
  0x36   :  { %273 = vmatprep.mubr.f32.mxu1 %v584_v0  ;;  %451 = vmatpush3.msra.mxu0 %v82_v1  ;;  %v194_v6 = vld [vmem:[#allocation7 + $0xe8] sm:$0xff]  ;;  %v193_v7 = vld [vmem:[#allocation7 + $0xe0] sm:$0xff]  ;;  %v192_v8 = vld [vmem:[#allocation7 + $0xd8] sm:$0xff]  ;;  %s398_s27 = sshll.u32 %s586_s26, 4  ;;  %s399_s27 = int_to_ptr.vmem [resolvable:$true] %s398_s27 }
  0x37   :  { %452 = vmatprep.subr.mxu0 %v584_v0  ;;  %209 = vmatprep.subr.mxu1 %v196_v4  ;;  %v191_v9 = vld [vmem:[#allocation7 + $0xd0] sm:$0xff]  ;;  %v190_v10 = vld [vmem:[#allocation7 + $0xc8] sm:$0xff]  ;;  %v189_v11 = vld [vmem:[#allocation7 + $0xc0] sm:$0xff]  ;;  %p553_p7 = scmp.lt.s32.totalorder %s399_s27, %s399_s27 }
  0x38   :  { %453 = vmatpush3.msra.mxu0 %v81_v2  ;;  %210 = vmatpush1.msra.mxu1 %v195_v5  ;;  %v188_v12 = vld [vmem:[#allocation7 + $0xb8] sm:$0xff]  ;;  %v187_v13 = vld [vmem:[#allocation7 + $0xb0] sm:$0xff]  ;;  %v186_v14 = vld [vmem:[#allocation7 + $0xa8] sm:$0xff] }
  0x39   :  { %455 = vmatmul.mubr.msk.f32.vlgmr.msra.gmra.mxu0 %vm90_vm1, %v80_v3  ;;  %211 = vmatprep.subr.mxu1 %v194_v6  ;;  %v185_v15 = vld [vmem:[#allocation7 + $0xa0] sm:$0xff]  ;;  %v184_v16 = vld [vmem:[#allocation7 + $0x98] sm:$0xff]  ;;  %v183_v17 = vld [vmem:[#allocation7 + $0x90] sm:$0xff] }
  0x3a   :  { %212 = vmatpush1.msra.mxu1 %v193_v7  ;;  %v182_v18 = vld [vmem:[#allocation7 + $0x88] sm:$0xff]  ;;  %v181_v19 = vld [vmem:[#allocation7 + $0x80] sm:$0xff]  ;;  %v180_v20 = vld [vmem:[#allocation7 + $0x78] sm:$0xff] }
  0x3b   :  { %213 = vmatprep.subr.mxu1 %v192_v8  ;;  %v179_v21 = vld [vmem:[#allocation7 + $0x70] sm:$0xff]  ;;  %v178_v22 = vld [vmem:[#allocation7 + $0x68] sm:$0xff]  ;;  %v177_v23 = vld [vmem:[#allocation7 + $0x60] sm:$0xff] }
  0x3c   :  { %214 = vmatpush1.msra.mxu1 %v191_v9  ;;  %v176_v24 = vld [vmem:[#allocation7 + $0x58] sm:$0xff]  ;;  %v175_v25 = vld [vmem:[#allocation7 + $0x50] sm:$0xff]  ;;  %v174_v26 = vld [vmem:[#allocation7 + $0x48] sm:$0xff]  ;;  %v199_v9 = vlaneseq }
  0x3d   :  { %215 = vmatprep.subr.mxu1 %v190_v10  ;;  %v173_v27 = vld [vmem:[#allocation7 + $0x40] sm:$0xff]  ;;  %v172_v28 = vld [vmem:[#allocation7 + $0x38] sm:$0xff]  ;;  %v171_v29 = vld [vmem:[#allocation7 + $0x30] sm:$0xff] }
  0x3e   :  { %216 = vmatpush1.msra.mxu1 %v189_v11  ;;  %v170_v30 = vld [vmem:[#allocation7 + $0x28] sm:$0xff]  ;;  %v169_v31 = vld [vmem:[#allocation7 + $0x20] sm:$0xff]  ;;  %v168_v32 = vld [vmem:[#allocation7 + $0x18] sm:$0xff]  ;;  %v200_v10 = vshrl.u32 %v199_v9, 7 }
  0x3f   :  { %217 = vmatprep.subr.mxu1 %v188_v12  ;;  %v167_v33 = vld [vmem:[#allocation7 + $0x10] sm:$0xff]  ;;  %v166_v34 = vld [vmem:[#allocation7 + $0x8] sm:$0xff]  ;;  %v165_v35 = vld [vmem:[#allocation7] sm:$0xff] }
  0x40   :  { %218 = vmatpush1.msra.mxu1 %v187_v13  ;;  %v313_v36 = vld [vmem:[#allocation8 + $0xf8] sm:$0xff]  ;;  %v312_v38 = vld [vmem:[#allocation8 + $0xf0] sm:$0xff]  ;;  %v311_v40 = vld [vmem:[#allocation8 + $0xe8] sm:$0xff]  ;;  %v201_v11 = vsub.s32 0, %v200_v10  ;;  %v205_v13 = vsub.s32 1, %v200_v10 }
  0x41   :  { %219 = vmatprep.subr.mxu1 %v186_v14  ;;  %v297_v37 = vld [vmem:[#allocation8 + $0x78] sm:$0xff]  ;;  %415 = vmatprep.subr.mxu0 %v313_v36  ;;  %v296_v39 = vld [vmem:[#allocation8 + $0x70] sm:$0xff]  ;;  %v295_v41 = vld [vmem:[#allocation8 + $0x68] sm:$0xff] }
  0x42   :  { %220 = vmatpush1.msra.mxu1 %v185_v15  ;;  %416 = vmatpush3.msra.mxu0 %v297_v37  ;;  %v310_v42 = vld [vmem:[#allocation8 + $0xe0] sm:$0xff]  ;;  %v309_v44 = vld [vmem:[#allocation8 + $0xd8] sm:$0xff]  ;;  %v308_v46 = vld [vmem:[#allocation8 + $0xd0] sm:$0xff] }
  0x43   :  { %221 = vmatprep.subr.mxu1 %v184_v16  ;;  %417 = vmatprep.subr.mxu0 %v312_v38  ;;  %v294_v43 = vld [vmem:[#allocation8 + $0x60] sm:$0xff]  ;;  %v293_v45 = vld [vmem:[#allocation8 + $0x58] sm:$0xff]  ;;  %v292_v47 = vld [vmem:[#allocation8 + $0x50] sm:$0xff] }
  0x44   :  { %222 = vmatpush1.msra.mxu1 %v183_v17  ;;  %418 = vmatpush3.msra.mxu0 %v296_v39  ;;  %v307_v48 = vld [vmem:[#allocation8 + $0xc8] sm:$0xff]  ;;  %v306_v50 = vld [vmem:[#allocation8 + $0xc0] sm:$0xff]  ;;  %v305_v52 = vld [vmem:[#allocation8 + $0xb8] sm:$0xff] }
  0x45   :  { %223 = vmatprep.subr.mxu1 %v182_v18  ;;  %419 = vmatprep.subr.mxu0 %v311_v40  ;;  %v291_v49 = vld [vmem:[#allocation8 + $0x48] sm:$0xff]  ;;  %v290_v51 = vld [vmem:[#allocation8 + $0x40] sm:$0xff]  ;;  %v289_v53 = vld [vmem:[#allocation8 + $0x38] sm:$0xff] }
  0x46   :  { %224 = vmatpush1.msra.mxu1 %v181_v19  ;;  %420 = vmatpush3.msra.mxu0 %v295_v41  ;;  %v304_v54 = vld [vmem:[#allocation8 + $0xb0] sm:$0xff]  ;;  %v303_v56 = vld [vmem:[#allocation8 + $0xa8] sm:$0xff]  ;;  %v302_v58 = vld [vmem:[#allocation8 + $0xa0] sm:$0xff] }
  0x47   :  { %225 = vmatprep.subr.mxu1 %v180_v20  ;;  %421 = vmatprep.subr.mxu0 %v310_v42  ;;  %v288_v55 = vld [vmem:[#allocation8 + $0x30] sm:$0xff]  ;;  %v287_v57 = vld [vmem:[#allocation8 + $0x28] sm:$0xff]  ;;  %v286_v59 = vld [vmem:[#allocation8 + $0x20] sm:$0xff] }
  0x48   :  { %226 = vmatpush1.msra.mxu1 %v179_v21  ;;  %422 = vmatpush3.msra.mxu0 %v294_v43  ;;  %v409_v60 = vld [vmem:[%s659_s2] ss:$0 sm:$0xff]  ;;  %v301_v1 = vld [vmem:[#allocation8 + $0x98] sm:$0xff]  ;;  %v300_v3 = vld [vmem:[#allocation8 + $0x90] sm:$0xff] }
  0x49   :  { %227 = vmatprep.subr.mxu1 %v178_v22  ;;  %423 = vmatprep.subr.mxu0 %v309_v44  ;;  %v285_v2 = vld [vmem:[#allocation8 + $0x18] sm:$0xff]  ;;  %v284_v4 = vld [vmem:[#allocation8 + $0x10] sm:$0xff]  ;;  %v299_v5 = vld [vmem:[#allocation8 + $0x88] sm:$0xff] }
  0x4a   :  { %228 = vmatpush1.msra.mxu1 %v177_v23  ;;  %424 = vmatpush3.msra.mxu0 %v293_v45  ;;  %v283_v6 = vld [vmem:[#allocation8 + $0x8] sm:$0xff]  ;;  %v298_v7 = vld [vmem:[#allocation8 + $0x80] sm:$0xff] }
  0x4b   :  { %229 = vmatprep.subr.mxu1 %v176_v24  ;;  %425 = vmatprep.subr.mxu0 %v308_v46  ;;  %v282_v8 = vld [vmem:[#allocation8] sm:$0xff]  ;;  %v197_v12 = vld [vmem:[%s661_s4] sm:$0x3]  ;;  %s548_s4 = scalar_lea.vmem %s399_s27, 128 }
  0x4c   :  { %230 = vmatpush1.msra.mxu1 %v175_v25  ;;  %426 = vmatpush3.msra.mxu0 %v292_v47  ;;  %v202_v14 = vrot.slane %v197_v12, %v201_v11  ;;  %v206_v15 = vrot.slane %v197_v12, %v205_v13  ;;  %v411_v23 = vld [vmem:[%s663_s6] ss:$0 sm:$0xff]  ;;  %p549_p6 = scmp.ne.s32.totalorder %s399_s27, %s548_s4  ;;  %p554_p8 = scmp.lt.s32.totalorder %s548_s4, %s548_s4 }
  0x4d   :  { %231 = vmatprep.subr.mxu1 %v174_v26  ;;  %427 = vmatprep.subr.mxu0 %v307_v48 }
  0x4e   :  { %232 = vmatpush1.msra.mxu1 %v173_v27  ;;  %428 = vmatpush3.msra.mxu0 %v291_v49  ;;  %p555_p9 = por %p554_p8, %p553_p7 }
  0x4f   :  { %233 = vmatprep.subr.mxu1 %v172_v28  ;;  %429 = vmatprep.subr.mxu0 %v306_v50 }
  0x50   :  { %234 = vmatpush1.msra.mxu1 %v171_v29  ;;  %430 = vmatpush3.msra.mxu0 %v290_v51  ;;  %p556_p10 = pnand %p555_p9, %p549_p6 }
  0x51   :  { %235 = vmatprep.subr.mxu1 %v170_v30  ;;  %431 = vmatprep.subr.mxu0 %v305_v52 }
  0x52   :  { %236 = vmatpush1.msra.mxu1 %v169_v31  ;;  %432 = vmatpush3.msra.mxu0 %v289_v53 }
  0x53   :  { %237 = vmatprep.subr.mxu1 %v168_v32  ;;  %433 = vmatprep.subr.mxu0 %v304_v54 }
  0x54   :  { %238 = vmatpush1.msra.mxu1 %v167_v33  ;;  %434 = vmatpush3.msra.mxu0 %v288_v55 }
  0x55   :  { %239 = vmatprep.subr.mxu1 %v166_v34  ;;  %435 = vmatprep.subr.mxu0 %v303_v56 }
  0x56   :  { %240 = vmatpush1.msra.mxu1 %v165_v35  ;;  %436 = vmatpush3.msra.mxu0 %v287_v57 }
  0x57   :  { %437 = vmatprep.subr.mxu0 %v302_v58 }
  0x58   :  { %438 = vmatpush3.msra.mxu0 %v286_v59 }
  0x59   :  { %439 = vmatprep.subr.mxu0 %v301_v1 }
  0x5a   :  { %440 = vmatpush3.msra.mxu0 %v285_v2 }
  0x5b   :  { %441 = vmatprep.subr.mxu0 %v300_v3 }
  0x5c   :  { %442 = vmatpush3.msra.mxu0 %v284_v4 }
  0x5d   :  { %443 = vmatprep.subr.mxu0 %v299_v5 }
  0x5e   :  { %444 = vmatpush3.msra.mxu0 %v283_v6 }
  0x5f   :  { %445 = vmatprep.subr.mxu0 %v298_v7 }
  0x60   :  { %446 = vmatpush3.msra.mxu0 %v282_v8 }
  0xf9   :  { %v160_v61 = vpop.f32.mrf.mxu0 }
  0xfa   :  { %v161_v62 = vadd.f32 %v409_v60, %v160_v61 }
  0xfb   :  { %v456_v63 = vpop.f32.mrf.mxu0 }
  0xfc   :  { %v164_v0 = vmax.f32 %v161_v62, 0.0 }
  0xfe   :  { %274 = vmatmul.mubr.f32.vlgmr.msra.gmra.mxu1 %v164_v0 }
 0x1be   :  { %v275_v16 = vpop.f32.mrf.mxu1 }
 0x1bf   :  { %v276_v17 = vadd.f32 %v275_v16, %v202_v14 }
 0x1c0   :  { %v277_v18 = vpop.f32.mrf.mxu1 }
 0x1c1   :  { %v278_v19 = vadd.f32 %v277_v18, %v206_v15  ;;  %v280_v21 = vmax.f32 %v276_v17, 0.0 }
 0x1c3   :  { %v281_v20 = vmax.f32 %v278_v19, 0.0 }
 0x1c5   :  { %385 = vmatprep.mubr.f32.mxu0 %v281_v20 }
 0x1c6   :  { %386 = vmatmul.mubr.f32.vlgmr.msra.gmra.mxu0 %v280_v21 }
 0x286   :  { %v447_v22 = vpop.f32.mrf.mxu0 }
 0x288   :  { %v448_v24 = vpop.f32.mrf.mxu0 }
 0x289   :  { %v449_v25 = vadd.f32 %v448_v24, %v447_v22 }
 0x28b   :  { %v388_v26 = vadd.f32 %v449_v25, %v411_v23 }
 0x28d   :  { %391 = vst [vmem:[#allocation10] sm:$0xff] %v388_v26 }
 0x28e   :  { %559 = shalt.err (!%p556_p10)
}
 0x28f   :  { %401 = dma.vmem_to_hbm [thread:$0]  %s399_s27, 128, %s664_s7, [#allocation4]  }
 0x290   :  { %574 = dma.done.wait [#allocation4], 128  }
 0x291   :  { %575 = vsyncadd [#allocation4], 4294967168 }
 0x292   :  { %405 = vsyncpa [#allocation3], 1 }
 0x293   :  { %406 = vsyncpa [#allocation6], 1 }
 0x294   :  { %407 = vsyncpa [#allocation9], 1 }
 0x295   :  { %408 = vsyncpa [#allocation4], 1 }

</bundles_post_ra>
